<compile_context>
chip_gen: v6e
topology: v6e:2x2x1
jax: 0.10.0
libtpu: 0.0.40
codegen_flags: <defaults>
</compile_context>

<pallas_src>
import functools

import jax
import jax.numpy as jnp
from jax.experimental import pallas as pl
from jax.experimental.pallas import tpu as pltpu

BN_EPS = 1e-5
_MIB = 1024 * 1024


# --------------------------------------------------------------------------
# helpers
# --------------------------------------------------------------------------
def _vmem_capacity_bytes():
    try:
        return int(pltpu.get_tpu_info().vmem_capacity_bytes)
    except Exception:
        return 64 * _MIB  # conservative default (v7x-sized); v5e/v6e have 128 MiB


def _pick_fold(C_out, Wo, C_in):
    """Smallest fold k (divisor of Wo, so no padding is ever needed) such that
    the folded output width k*C_out fills the 256-wide MXU / lane-dense stores;
    fall back to 128, then to the widest affordable fold."""
    divs = [d for d in range(1, Wo + 1) if Wo % d == 0]

    def affordable(d):
        return d * 4 * C_in <= 2048 and d * C_out <= 1024

    for pref in (256, 128):
        cands = [d for d in divs if affordable(d) and (d * C_out) % pref == 0]
        if cands:
            return min(cands)
    cands = [d for d in divs if affordable(d)]
    return max(cands) if cands else 1


def _fold_input(x, k):
    """NCHW -> folded rows.  One fused gather/transpose copy:
    row r = (n, ho, wf); lane j = ((f*2 + a)*2 + b)*C_in + c
    value  = x[n, c, 2*ho + a, 2*(wf*k + f) + b]."""
    N, C_in, H, W = x.shape
    Ho, Wo = H // 2, W // 2
    Wf = Wo // k
    xf = x.reshape(N, C_in, Ho, 2, Wf, k, 2)
    xf = xf.transpose(0, 2, 4, 5, 3, 6, 1)  # (N, Ho, Wf, k, a, b, C_in)
    return xf.reshape(N * Ho * Wf, k * 4 * C_in)


def _unfold_output(out_fold, N, C_out, Ho, Wo, k):
    Wf = Wo // k
    out = out_fold.reshape(N, Ho, Wf, k, C_out)
    return out.transpose(0, 4, 1, 2, 3).reshape(N, C_out, Ho, Wo)


def _build_weight(w1, w2, C_in, C_out, k):
    """Fused conv weight: parity-selecting zero rows + block-diagonal conv1/conv2,
    replicated along the lane fold with kron(I_k, .)."""
    C_half = C_out // 2
    w4 = jnp.zeros((2, 2, C_in, C_out), jnp.float32)
    w4 = w4.at[0, 0, :, :C_half].set(w1.reshape(C_half, C_in).T)   # even/even grid
    w4 = w4.at[1, 1, :, C_half:].set(w2.reshape(C_half, C_in).T)   # odd/odd grid
    w4 = w4.reshape(4 * C_in, C_out)
    if k == 1:
        return w4
    return jnp.kron(jnp.eye(k, dtype=jnp.float32), w4)  # (k*4*C_in, k*C_out)


def _fold_reduce_mats(C_out, k):
    """E pools folded lanes back to per-channel stats (sum over folds);
    B broadcasts per-channel coefficients to folded lanes.  Both tiny."""
    eye = jnp.eye(C_out, dtype=jnp.float32)
    E = jnp.tile(eye, (k, 1))   # (k*C_out, C_out)
    B = jnp.tile(eye, (1, k))   # (C_out, k*C_out)
    return E, B


# --------------------------------------------------------------------------
# kernels
# --------------------------------------------------------------------------
def _fused_kernel(x_ref, w_ref, e_ref, b_ref, gamma_ref, beta_ref, o_ref, *, m_total):
    """Fits-in-VMEM fast path: one pass over x -> conv -> stats -> BN."""
    x = jnp.maximum(x_ref[...], 0.0)                                       # ReLU (VPU)
    y = jnp.dot(x, w_ref[...], preferred_element_type=jnp.float32)        # fused convs (MXU)
    s = jnp.sum(y, axis=0, keepdims=True)                                  # (1, KC)
    sq = jnp.sum(y * y, axis=0, keepdims=True)
    # pool the k lane-folds back to per-channel stats via tiny matmuls (no relayout)
    s_c = jnp.dot(s, e_ref[...], preferred_element_type=jnp.float32)      # (1, C_out)
    sq_c = jnp.dot(sq, e_ref[...], preferred_element_type=jnp.float32)
    mean = s_c / m_total
    var = jnp.maximum(sq_c / m_total - mean * mean, 0.0)
    inv = jax.lax.rsqrt(var + BN_EPS)
    scale_c = gamma_ref[...] * inv
    shift_c = beta_ref[...] - mean * scale_c
    scale_k = jnp.dot(scale_c, b_ref[...], preferred_element_type=jnp.float32)  # (1, KC)
    shift_k = jnp.dot(shift_c, b_ref[...], preferred_element_type=jnp.float32)
    o_ref[...] = (y * scale_k + shift_k).astype(o_ref.dtype)


def _stats_kernel(x_ref, w_ref, s_ref, sq_ref, *, rows_total, block_rows, mask_rows):
    """Streaming pass 1: per-tile partial sum / sum-of-squares (lane-dense outputs)."""
    x = jnp.maximum(x_ref[...], 0.0)
    if mask_rows:  # ragged last tile handled in-kernel (no jnp.pad in the wrapper)
        row = jax.lax.broadcasted_iota(jnp.int32, x.shape, 0) + pl.program_id(0) * block_rows
        x = jnp.where(row < rows_total, x, 0.0)
    y = jnp.dot(x, w_ref[...], preferred_element_type=jnp.float32)
    s_ref[...] = jnp.sum(y, axis=0, keepdims=True)
    sq_ref[...] = jnp.sum(y * y, axis=0, keepdims=True)


def _norm_kernel(x_ref, w_ref, scale_ref, shift_ref, o_ref):
    """Streaming pass 2: recompute the cheap conv and apply folded BN affine."""
    x = jnp.maximum(x_ref[...], 0.0)
    y = jnp.dot(x, w_ref[...], preferred_element_type=jnp.float32)
    o_ref[...] = (y * scale_ref[...] + shift_ref[...]).astype(o_ref.dtype)


# --------------------------------------------------------------------------
# wrapper
# --------------------------------------------------------------------------
@functools.partial(jax.jit, static_argnames=("force_streaming",))
def factorized_reduce(x, w1, w2, gamma, beta, *, force_streaming=False):
    """x: (N, C_in, H, W) f32 NCHW.  w1, w2: (C_out//2, C_in, 1, 1).
    gamma, beta: (C_out,).  Returns (N, C_out, H//2, W//2) NCHW."""
    N, C_in, H, W = x.shape
    C_half = w1.shape[0]
    C_out = 2 * C_half
    assert H % 2 == 0 and W % 2 == 0, "even spatial dims expected"
    Ho, Wo = H // 2, W // 2
    M = N * Ho * Wo                      # true number of output positions

    k = _pick_fold(C_out, Wo, C_in)      # lane fold (divides Wo -> no padding)
    KC = k * C_out
    K_in = k * 4 * C_in
    M_rows = N * Ho * (Wo // k)          # folded row count (exact, no pad)

    x_fold = _fold_input(x, k)
    w_big = _build_weight(w1, w2, C_in, C_out, k)

    # ---- generation-aware VMEM budget -------------------------------------
    vmem_cap = _vmem_capacity_bytes()
    vmem_limit = min(int(0.75 * vmem_cap), 96 * _MIB)   # ~48 MiB on v7x, 96 MiB on v5e/v6e

    # ---- fast path: whole problem resident in VMEM (x read once) ----------
    fast_bytes = 4 * (M_rows * K_in + 3 * M_rows * KC + K_in * KC)
    if (not force_streaming) and fast_bytes <= int(0.45 * vmem_cap):
        E, B = _fold_reduce_mats(C_out, k)
        out_fold = pl.pallas_call(
            functools.partial(_fused_kernel, m_total=float(M)),
            out_shape=jax.ShapeDtypeStruct((M_rows, KC), jnp.float32),
            in_specs=[pl.BlockSpec(memory_space=pltpu.MemorySpace.VMEM)] * 6,
            out_specs=pl.BlockSpec(memory_space=pltpu.MemorySpace.VMEM),
            compiler_params=pltpu.CompilerParams(vmem_limit_bytes=vmem_limit),
        )(x_fold, w_big, E, B,
          gamma.reshape(1, C_out).astype(jnp.float32),
          beta.reshape(1, C_out).astype(jnp.float32))
        return _unfold_output(out_fold, N, C_out, Ho, Wo, k)

    # ---- streaming path: two pipelined, megacore-parallel passes ----------
    bytes_per_row = 4 * (K_in + KC)
    budget = int(0.30 * vmem_limit)                     # double-buffered in + out blocks
    TM = max(8, min(budget // (2 * bytes_per_row), 4096))
    TM = (TM // 8) * 8
    if M_rows > 8:  # make sure >= 2 tiles so both v7x TensorCores get work
        TM = min(TM, max(8, (((M_rows + 1) // 2) + 7) // 8 * 8))
    n_tiles = pl.cdiv(M_rows, TM)
    mask_rows = (M_rows % TM) != 0

    cparams = pltpu.CompilerParams(
        dimension_semantics=("parallel",),
        vmem_limit_bytes=vmem_limit,
    )

    stats_sum, stats_sq = pl.pallas_call(
        functools.partial(_stats_kernel, rows_total=M_rows, block_rows=TM,
                          mask_rows=mask_rows),
        out_shape=(jax.ShapeDtypeStruct((n_tiles, KC), jnp.float32),
                   jax.ShapeDtypeStruct((n_tiles, KC), jnp.float32)),
        grid=(n_tiles,),
        in_specs=[pl.BlockSpec((TM, K_in), lambda i: (i, 0)),
                  pl.BlockSpec((K_in, KC), lambda i: (0, 0))],
        out_specs=(pl.BlockSpec((1, KC), lambda i: (i, 0)),
                   pl.BlockSpec((1, KC), lambda i: (i, 0))),
        compiler_params=cparams,
    )(x_fold, w_big)

    # tiny cross-tile / cross-fold reduction + BN coefficients (pure JAX)
    s = stats_sum.sum(axis=0).reshape(k, C_out).sum(axis=0)
    sq = stats_sq.sum(axis=0).reshape(k, C_out).sum(axis=0)
    mean = s / M
    var = jnp.maximum(sq / M - mean * mean, 0.0)
    inv = jax.lax.rsqrt(var + BN_EPS)
    scale = gamma * inv
    shift = beta - mean * scale
    scale_k = jnp.tile(scale, k).reshape(1, KC).astype(jnp.float32)
    shift_k = jnp.tile(shift, k).reshape(1, KC).astype(jnp.float32)

    out_fold = pl.pallas_call(
        _norm_kernel,
        out_shape=jax.ShapeDtypeStruct((M_rows, KC), jnp.float32),
        grid=(n_tiles,),
        in_specs=[pl.BlockSpec((TM, K_in), lambda i: (i, 0)),
                  pl.BlockSpec((K_in, KC), lambda i: (0, 0)),
                  pl.BlockSpec((1, KC), lambda i: (0, 0)),
                  pl.BlockSpec((1, KC), lambda i: (0, 0))],
        out_specs=pl.BlockSpec((TM, KC), lambda i: (i, 0)),
        compiler_params=cparams,
    )(x_fold, w_big, scale_k, shift_k)

    return _unfold_output(out_fold, N, C_out, Ho, Wo, k)


# --------------------------------------------------------------------------
# pure-JAX reference (PyTorch semantics) + self-test
# --------------------------------------------------------------------------
def _reference(x, w1, w2, gamma, beta):
    xr = jnp.maximum(x, 0.0)
    x1 = xr[:, :, 0::2, 0::2]
    x2 = xr[:, :, 1::2, 1::2]
    h1 = jnp.einsum('nchw,oc->nohw', x1, w1[:, :, 0, 0])
    h2 = jnp.einsum('nchw,oc->nohw', x2, w2[:, :, 0, 0])
    y = jnp.concatenate([h1, h2], axis=1)
    mean = y.mean(axis=(0, 2, 3), keepdims=True)
    var = ((y - mean) ** 2).mean(axis=(0, 2, 3), keepdims=True)
    yhat = (y - mean) / jnp.sqrt(var + BN_EPS)
    return yhat * gamma.reshape(1, -1, 1, 1) + beta.reshape(1, -1, 1, 1)


if __name__ == "__main__":
    key = jax.random.PRNGKey(0)
    k_x, k_w1, k_w2, k_x2 = jax.random.split(key, 4)

    # shapes consistent with nn.Conv2d(C_in, C_out//2, 1, stride=2, bias=False)
    N, C_in, H, W = 2, 4, 16, 16
    C_out = 8
    C_half = C_out // 2

    x = jax.random.normal(k_x, (N, C_in, H, W), dtype=jnp.float32)
    w1 = jax.random.normal(k_w1, (C_half, C_in, 1, 1), dtype=jnp.float32) * 0.1
    w2 = jax.random.normal(k_w2, (C_half, C_in, 1, 1), dtype=jnp.float32) * 0.1
    gamma = jnp.full((C_out,), 1.3, dtype=jnp.float32)   # non-trivial affine
    beta = jnp.full((C_out,), 0.2, dtype=jnp.float32)

    ref = _reference(x, w1, w2, gamma, beta)

    # 1) VMEM-resident fused fast path (the typical NAS-Bench-201/CIFAR regime)
    out = factorized_reduce(x, w1, w2, gamma, beta)
    jax.block_until_ready(out)
    assert out.shape == (N, C_out, H // 2, W // 2), out.shape
    err = float(jnp.max(jnp.abs(out - ref)))
    assert jnp.allclose(out, ref, atol=2e-3, rtol=2e-3), err

    # 2) streaming (tiled, 2-pass) fallback on the same inputs
    out_s = factorized_reduce(x, w1, w2, gamma, beta, force_streaming=True)
    jax.block_until_ready(out_s)
    err_s = float(jnp.max(jnp.abs(out_s - ref)))
    assert jnp.allclose(out_s, ref, atol=2e-3, rtol=2e-3), err_s

    # 3) non-power-of-two spatial dims -> exercises the in-kernel ragged-tile mask
    N2, H2, W2 = 3, 10, 10
    x2 = jax.random.normal(k_x2, (N2, C_in, H2, W2), dtype=jnp.float32)
    ref2 = _reference(x2, w1, w2, gamma, beta)
    out2 = factorized_reduce(x2, w1, w2, gamma, beta, force_streaming=True)
    jax.block_until_ready(out2)
    assert out2.shape == (N2, C_out, H2 // 2, W2 // 2), out2.shape
    err2 = float(jnp.max(jnp.abs(out2 - ref2)))
    assert jnp.allclose(out2, ref2, atol=2e-3, rtol=2e-3), err2

    print("KERNEL_OK")
</pallas_src>

<mosaic_0001>
module attributes {stable_mosaic.version = 11 : i64} {
  func.func @_fused_kernel(%arg0: memref<16x128xf32, #tpu.memory_space<vmem>>, %arg1: memref<128x64xf32, #tpu.memory_space<vmem>>, %arg2: memref<64x8xf32, #tpu.memory_space<vmem>>, %arg3: memref<8x64xf32, #tpu.memory_space<vmem>>, %arg4: memref<1x8xf32, #tpu.memory_space<vmem>>, %arg5: memref<1x8xf32, #tpu.memory_space<vmem>>, %arg6: memref<16x64xf32, #tpu.memory_space<vmem>>) attributes {dimension_semantics = [], scalar_prefetch = 0 : i64, scratch_operands = 0 : i64, tpu.core_type = #tpu.core_type<tc>} {
    %c0 = arith.constant 0 : index
    %c0_0 = arith.constant 0 : index
    %0 = vector.load %arg0[%c0, %c0_0] : memref<16x128xf32, #tpu.memory_space<vmem>>, vector<16x128xf32>
    %cst = arith.constant 0.000000e+00 : f32
    %1 = vector.broadcast %cst : f32 to vector<16x128xf32>
    %2 = arith.maximumf %0, %1 : vector<16x128xf32>
    %c0_1 = arith.constant 0 : index
    %c0_2 = arith.constant 0 : index
    %3 = vector.load %arg1[%c0_1, %c0_2] : memref<128x64xf32, #tpu.memory_space<vmem>>, vector<128x64xf32>
    %cst_3 = arith.constant dense<0.000000e+00> : vector<16x64xf32>
    %4 = tpu.matmul %2, %3, %cst_3 {dimension_numbers = #tpu.dot_dimension_numbers<[1], [0], [0], [1], [0, 0, 1, 1], [], []>} : vector<16x128xf32>, vector<128x64xf32>, vector<16x64xf32> -> vector<16x64xf32>
    %cst_4 = arith.constant dense<0.000000e+00> : vector<64xf32>
    %5 = vector.multi_reduction <add>, %4, %cst_4 [0] : vector<16x64xf32> to vector<64xf32>
    %6 = vector.shape_cast %5 : vector<64xf32> to vector<1x64xf32>
    %7 = arith.mulf %4, %4 : vector<16x64xf32>
    %cst_5 = arith.constant dense<0.000000e+00> : vector<64xf32>
    %8 = vector.multi_reduction <add>, %7, %cst_5 [0] : vector<16x64xf32> to vector<64xf32>
    %9 = vector.shape_cast %8 : vector<64xf32> to vector<1x64xf32>
    %c0_6 = arith.constant 0 : index
    %c0_7 = arith.constant 0 : index
    %10 = vector.load %arg2[%c0_6, %c0_7] : memref<64x8xf32, #tpu.memory_space<vmem>>, vector<64x8xf32>
    %cst_8 = arith.constant dense<0.000000e+00> : vector<1x8xf32>
    %11 = tpu.matmul %6, %10, %cst_8 {dimension_numbers = #tpu.dot_dimension_numbers<[1], [0], [0], [1], [0, 0, 1, 1], [], []>} : vector<1x64xf32>, vector<64x8xf32>, vector<1x8xf32> -> vector<1x8xf32>
    %c0_9 = arith.constant 0 : index
    %c0_10 = arith.constant 0 : index
    %12 = vector.load %arg2[%c0_9, %c0_10] : memref<64x8xf32, #tpu.memory_space<vmem>>, vector<64x8xf32>
    %cst_11 = arith.constant dense<0.000000e+00> : vector<1x8xf32>
    %13 = tpu.matmul %9, %12, %cst_11 {dimension_numbers = #tpu.dot_dimension_numbers<[1], [0], [0], [1], [0, 0, 1, 1], [], []>} : vector<1x64xf32>, vector<64x8xf32>, vector<1x8xf32> -> vector<1x8xf32>
    %cst_12 = arith.constant 1.280000e+02 : f32
    %14 = vector.broadcast %cst_12 : f32 to vector<1x8xf32>
    %15 = arith.divf %11, %14 : vector<1x8xf32>
    %cst_13 = arith.constant 1.280000e+02 : f32
    %16 = vector.broadcast %cst_13 : f32 to vector<1x8xf32>
    %17 = arith.divf %13, %16 : vector<1x8xf32>
    %18 = arith.mulf %15, %15 : vector<1x8xf32>
    %19 = arith.subf %17, %18 : vector<1x8xf32>
    %cst_14 = arith.constant 0.000000e+00 : f32
    %20 = vector.broadcast %cst_14 : f32 to vector<1x8xf32>
    %21 = arith.maximumf %19, %20 : vector<1x8xf32>
    %cst_15 = arith.constant 9.99999974E-6 : f32
    %22 = vector.broadcast %cst_15 : f32 to vector<1x8xf32>
    %23 = arith.addf %21, %22 : vector<1x8xf32>
    %24 = math.rsqrt %23 : vector<1x8xf32>
    %c0_16 = arith.constant 0 : index
    %c0_17 = arith.constant 0 : index
    %25 = vector.load %arg4[%c0_16, %c0_17] : memref<1x8xf32, #tpu.memory_space<vmem>>, vector<1x8xf32>
    %26 = arith.mulf %25, %24 : vector<1x8xf32>
    %c0_18 = arith.constant 0 : index
    %c0_19 = arith.constant 0 : index
    %27 = vector.load %arg5[%c0_18, %c0_19] : memref<1x8xf32, #tpu.memory_space<vmem>>, vector<1x8xf32>
    %28 = arith.mulf %15, %26 : vector<1x8xf32>
    %29 = arith.subf %27, %28 : vector<1x8xf32>
    %c0_20 = arith.constant 0 : index
    %c0_21 = arith.constant 0 : index
    %30 = vector.load %arg3[%c0_20, %c0_21] : memref<8x64xf32, #tpu.memory_space<vmem>>, vector<8x64xf32>
    %cst_22 = arith.constant dense<0.000000e+00> : vector<1x64xf32>
    %31 = tpu.matmul %26, %30, %cst_22 {dimension_numbers = #tpu.dot_dimension_numbers<[1], [0], [0], [1], [0, 0, 1, 1], [], []>} : vector<1x8xf32>, vector<8x64xf32>, vector<1x64xf32> -> vector<1x64xf32>
    %c0_23 = arith.constant 0 : index
    %c0_24 = arith.constant 0 : index
    %32 = vector.load %arg3[%c0_23, %c0_24] : memref<8x64xf32, #tpu.memory_space<vmem>>, vector<8x64xf32>
    %cst_25 = arith.constant dense<0.000000e+00> : vector<1x64xf32>
    %33 = tpu.matmul %29, %32, %cst_25 {dimension_numbers = #tpu.dot_dimension_numbers<[1], [0], [0], [1], [0, 0, 1, 1], [], []>} : vector<1x8xf32>, vector<8x64xf32>, vector<1x64xf32> -> vector<1x64xf32>
    %34 = vector.broadcast %31 : vector<1x64xf32> to vector<16x64xf32>
    %35 = arith.mulf %4, %34 : vector<16x64xf32>
    %36 = vector.broadcast %33 : vector<1x64xf32> to vector<16x64xf32>
    %37 = arith.addf %35, %36 : vector<16x64xf32>
    %c0_26 = arith.constant 0 : index
    %c0_27 = arith.constant 0 : index
    %38 = vector.load %arg6[%c0_26, %c0_27] : memref<16x64xf32, #tpu.memory_space<vmem>>, vector<16x64xf32>
    tpu.vector_store %arg6[%c0_26, %c0_27], %37 {strides = array<i32>} : memref<16x64xf32, #tpu.memory_space<vmem>>, vector<16x64xf32>,
    return
  }
}

</mosaic_0001>

<bundles_post_ra>
// kernel: tile.19
= control target key start
LH: loop header
LB: loop body
LE: loop exit
PB: predicated region body
PF: predicated region fallthrough
CT: control target
= control target key end

     0   :  { %vm4_vm0 = vcmask 1047556   ;;  %s99_s14 = smov 56   ;;  %s100_s19 = smov 40   ;;  %vm6_vm1 = vcmask 64512   ;;  %vm16_vm2 = vcmask 523712   ;;  %vm26_vm3 = vcmask 458112   ;;  %s196_s0 = inlined_call_operand.vmem [shape: f32[8,8,8], index: 0, kind: input, shape index: {}]   ;;  %s197_s1 = inlined_call_operand.vmem [shape: f32[8,64], index: 1, kind: output, shape index: {}]  }
   0x1   :  { %v78_v0 = vld [vmem:[%s196_s0 + $0x7] ss:$8 sm:$0xf]   ;;  %v82_v3 = vld [vmem:[%s196_s0 + $0x5] ss:$8 sm:$0xf]  }
   0x2   :  { %v79_v1 = vld [vmem:[%s196_s0 + $0x7] ss:$8 sm:$0xf0]   ;;  %v83_v4 = vld [vmem:[%s196_s0 + $0x5] ss:$8 sm:$0xf0]  }
   0x3   :  { %v13_v2 = vsel %vm4_vm0, %v79_v1, %v78_v0  ;;  %v33_v5 = vsel %vm4_vm0, %v83_v4, %v82_v3  ;;  %v80_v6 = vld [vmem:[%s196_s0 + $0x6] ss:$8 sm:$0xf]   ;;  %v84_v9 = vld [vmem:[%s196_s0 + $0x4] ss:$8 sm:$0xf]  }
   0x4   :  { %14 = vrot.lane.b32.xlu0 %v13_v2, %s99_s14  ;;  %v81_v7 = vld [vmem:[%s196_s0 + $0x6] ss:$8 sm:$0xf0]   ;;  %34 = vrot.lane.b32.xlu1 %v33_v5, %s100_s19  ;;  %v85_v10 = vld [vmem:[%s196_s0 + $0x4] ss:$8 sm:$0xf0]  }
   0x5   :  { %v23_v8 = vsel %vm4_vm0, %v81_v7, %v80_v6  ;;  %v86_v11 = vld [vmem:[%s196_s0 + $0x3] ss:$8 sm:$0xf]   ;;  %v43_v12 = vsel %vm4_vm0, %v85_v10, %v84_v9  ;;  %s101_s28 = smov 48   ;;  %s102_s4 = smov 32   ;;  %vm36_vm4 = vcmask 392512  }
   0x6   :  { %v87_v13 = vld [vmem:[%s196_s0 + $0x3] ss:$8 sm:$0xf0]   ;;  %v88_v14 = vld [vmem:[%s196_s0 + $0x2] ss:$8 sm:$0xf]  }
   0x7   :  { %v89_v15 = vld [vmem:[%s196_s0 + $0x2] ss:$8 sm:$0xf0]   ;;  %v53_v16 = vsel %vm4_vm0, %v87_v13, %v86_v11  ;;  %v90_v17 = vld [vmem:[%s196_s0 + $0x1] ss:$8 sm:$0xf]  }
   0x8   :  { %24 = vrot.lane.b32.xlu0 %v23_v8, %s101_s28  ;;  %44 = vrot.lane.b32.xlu1 %v43_v12, %s102_s4  ;;  %v63_v18 = vsel %vm4_vm0, %v89_v15, %v88_v14  ;;  %v91_v19 = vld [vmem:[%s196_s0 + $0x1] ss:$8 sm:$0xf0]   ;;  %v2_v20 = vld [vmem:[%s196_s0] ss:$8 sm:$0xf]  }
   0x9   :  { %v3_v21 = vld [vmem:[%s196_s0] ss:$8 sm:$0xf0]   ;;  %s103_s0 = smov 24   ;;  %s104_s13 = smov 16   ;;  %v73_v23 = vsel %vm4_vm0, %v91_v19, %v90_v17  ;;  %vm46_vm5 = vcmask 326912  }
   0xa   :  { %v5_v22 = vsel %vm4_vm0, %v3_v21, %v2_v20  ;;  %s105_s16 = smov 8   ;;  %vm56_vm6 = vcmask 261312   ;;  %vm66_vm7 = vcmask 195712   ;;  %vm76_vm8 = vcmask 130112  }
   0xb   :  { %7 = vst.msk [vmem:[%s197_s1] sm:$0xff] %vm6_vm1, %v5_v22  }
   0xc   :  { %54 = vrot.lane.b32.xlu0 %v53_v16, %s103_s0  ;;  %64 = vrot.lane.b32.xlu1 %v63_v18, %s104_s13 }
  0x10   :  { %74 = vrot.lane.b32.xlu0 %v73_v23, %s105_s16 }
  0x76   :  { %v15_v24 = vpop.permute.xlu0 %14   ;;  %v35_v25 = vpop.permute.xlu1 %34  }
  0x77   :  { %17 = vst.msk [vmem:[%s197_s1] sm:$0xff] %vm16_vm2, %v15_v24  }
  0x7a   :  { %v25_v26 = vpop.permute.xlu0 %24   ;;  %v45_v27 = vpop.permute.xlu1 %44  }
  0x7b   :  { %27 = vst.msk [vmem:[%s197_s1] sm:$0xff] %vm26_vm3, %v25_v26  }
  0x7c   :  { %37 = vst.msk [vmem:[%s197_s1] sm:$0xff] %vm36_vm4, %v35_v25  }
  0x7d   :  { %47 = vst.msk [vmem:[%s197_s1] sm:$0xff] %vm46_vm5, %v45_v27  }
  0x7e   :  { %v55_v28 = vpop.permute.xlu0 %54   ;;  %v65_v29 = vpop.permute.xlu1 %64  }
  0x7f   :  { %57 = vst.msk [vmem:[%s197_s1] sm:$0xff] %vm56_vm6, %v55_v28  }
  0x80   :  { %67 = vst.msk [vmem:[%s197_s1] sm:$0xff] %vm66_vm7, %v65_v29  }
  0x82   :  { %v75_v30 = vpop.permute.xlu0 %74  }
  0x83   :  { %77 = vst.msk [vmem:[%s197_s1] sm:$0xff] %vm76_vm8, %v75_v30  }

// kernel: factorized_reduce.1
= control target key start
LH: loop header
LB: loop body
LE: loop exit
PB: predicated region body
PF: predicated region fallthrough
CT: control target
= control target key end

     0   :  { %v603_v20 = vmov 0.0   ;;  %vm604_vm0 = vmmov 0   ;;  %vm118_vm1 = vcmask 523264   ;;  %vm307_vm2 = vcmask 64512   ;;  %s779_s1 = inlined_call_operand.vmem [shape: f32[128,64], index: 1, kind: input, shape index: {}]   ;;  %s780_s0 = inlined_call_operand.vmem [shape: f32[16,128], index: 0, kind: input, shape index: {}]   ;;  %s781_s2 = inlined_call_operand.vmem [shape: f32[64,8], index: 2, kind: input, shape index: {}]   ;;  %s782_s3 = inlined_call_operand.vmem [shape: f32[8,64], index: 3, kind: input, shape index: {}]   ;;  %s783_s4 = inlined_call_operand.vmem [shape: f32[1,8], index: 4, kind: input, shape index: {}]   ;;  %s784_s5 = inlined_call_operand.vmem [shape: f32[1,8], index: 5, kind: input, shape index: {}]   ;;  %s785_s6 = inlined_call_operand.vmem [shape: f32[16,64], index: 6, kind: output, shape index: {}]  }
   0x1   :  { %v42_v0 = vld [vmem:[%s779_s1 + $0x78] sm:$0xff]  ;;  %v41_v1 = vld [vmem:[%s779_s1 + $0x70] sm:$0xff]  ;;  %v40_v2 = vld [vmem:[%s779_s1 + $0x68] sm:$0xff]  ;;  %551 = vmatprep.subr.mxu1 %v603_v20  ;;  %567 = vmatprep.mubr.msk.f32.mxu1 %vm604_vm0, %v603_v20 }
   0x2   :  { %516 = vmatprep.subr.mxu0 %v42_v0  ;;  %v39_v3 = vld [vmem:[%s779_s1 + $0x60] sm:$0xff]  ;;  %v38_v5 = vld [vmem:[%s779_s1 + $0x58] sm:$0xff]  ;;  %v37_v7 = vld [vmem:[%s779_s1 + $0x50] sm:$0xff] }
   0x3   :  { %517 = vmatpush3.msra.mxu0 %v42_v0  ;;  %v23_v4 = vld [vmem:[%s780_s0] sm:$0xff]  ;;  %v36_v8 = vld [vmem:[%s779_s1 + $0x48] sm:$0xff]  ;;  %v34_v10 = vld [vmem:[%s779_s1 + $0x38] sm:$0xff] }
   0x4   :  { %518 = vmatprep.subr.mxu0 %v41_v1  ;;  %v25_v6 = vmax.f32 %v23_v4, 0.0  ;;  %v35_v9 = vld [vmem:[%s779_s1 + $0x40] sm:$0xff]  ;;  %v33_v11 = vld [vmem:[%s779_s1 + $0x30] sm:$0xff]  ;;  %v32_v12 = vld [vmem:[%s779_s1 + $0x28] sm:$0xff]  ;;  %v454_v4 = vlaneseq }
   0x5   :  { %519 = vmatpush3.msra.mxu0 %v41_v1  ;;  %v31_v13 = vld [vmem:[%s779_s1 + $0x20] sm:$0xff]  ;;  %v30_v14 = vld [vmem:[%s779_s1 + $0x18] sm:$0xff]  ;;  %v29_v15 = vld [vmem:[%s779_s1 + $0x10] sm:$0xff] }
   0x6   :  { %520 = vmatprep.subr.mxu0 %v40_v2  ;;  %548 = vmatprep.mubr.f32.mxu0 %v25_v6  ;;  %v28_v16 = vld [vmem:[%s779_s1 + $0x8] sm:$0xff]  ;;  %v27_v18 = vld [vmem:[%s779_s1] sm:$0xff]  ;;  %v146_v21 = vld [vmem:[%s781_s2 + $0x38] sm:$0xff] }
   0x7   :  { %521 = vmatpush3.msra.mxu0 %v40_v2  ;;  %v24_v17 = vld [vmem:[%s780_s0 + $0x8] sm:$0xff]  ;;  %552 = vmatpush3.msra.mxu1 %v146_v21  ;;  %v145_v22 = vld [vmem:[%s781_s2 + $0x30] sm:$0xff]  ;;  %v143_v24 = vld [vmem:[%s781_s2 + $0x20] sm:$0xff] }
   0x8   :  { %522 = vmatprep.subr.mxu0 %v39_v3  ;;  %v26_v19 = vmax.f32 %v24_v17, 0.0  ;;  %553 = vmatprep.subr.mxu1 %v603_v20  ;;  %v144_v23 = vld [vmem:[%s781_s2 + $0x28] sm:$0xff]  ;;  %v142_v25 = vld [vmem:[%s781_s2 + $0x18] sm:$0xff]  ;;  %v141_v26 = vld [vmem:[%s781_s2 + $0x10] sm:$0xff] }
   0x9   :  { %523 = vmatpush3.msra.mxu0 %v39_v3  ;;  %554 = vmatpush3.msra.mxu1 %v145_v22  ;;  %v140_v27 = vld [vmem:[%s781_s2 + $0x8] sm:$0xff]  ;;  %v139_v28 = vld [vmem:[%s781_s2] sm:$0xff] }
   0xa   :  { %524 = vmatprep.subr.mxu0 %v38_v5  ;;  %555 = vmatprep.subr.mxu1 %v603_v20  ;;  %v306_v51 = vld [vmem:[%s782_s3] sm:$0xff] }
   0xb   :  { %525 = vmatpush3.msra.mxu0 %v38_v5  ;;  %556 = vmatpush3.msra.mxu1 %v144_v23  ;;  %v301_v62 = vld [vmem:[%s783_s4] sm:$0x1]  ;;  %v455_v5 = vshrl.u32 %v454_v4, 7 }
   0xc   :  { %526 = vmatprep.subr.mxu0 %v37_v7  ;;  %557 = vmatprep.subr.mxu1 %v603_v20  ;;  %v303_v1 = vld [vmem:[%s784_s5] sm:$0x1] }
   0xd   :  { %527 = vmatpush3.msra.mxu0 %v37_v7  ;;  %558 = vmatpush3.msra.mxu1 %v143_v24  ;;  %v456_v6 = vsub.s32 0, %v455_v5 }
   0xe   :  { %528 = vmatprep.subr.mxu0 %v36_v8  ;;  %559 = vmatprep.subr.mxu1 %v603_v20 }
   0xf   :  { %529 = vmatpush3.msra.mxu0 %v36_v8  ;;  %560 = vmatpush3.msra.mxu1 %v142_v25 }
  0x10   :  { %530 = vmatprep.subr.mxu0 %v35_v9  ;;  %561 = vmatprep.subr.mxu1 %v603_v20 }
  0x11   :  { %531 = vmatpush3.msra.mxu0 %v35_v9  ;;  %562 = vmatpush3.msra.mxu1 %v141_v26 }
  0x12   :  { %532 = vmatprep.subr.mxu0 %v34_v10  ;;  %563 = vmatprep.subr.mxu1 %v603_v20 }
  0x13   :  { %533 = vmatpush3.msra.mxu0 %v34_v10  ;;  %564 = vmatpush3.msra.mxu1 %v140_v27 }
  0x14   :  { %534 = vmatprep.subr.mxu0 %v33_v11  ;;  %565 = vmatprep.subr.mxu1 %v603_v20 }
  0x15   :  { %535 = vmatpush3.msra.mxu0 %v33_v11  ;;  %566 = vmatpush3.msra.mxu1 %v139_v28 }
  0x16   :  { %536 = vmatprep.subr.mxu0 %v32_v12  ;;  %570 = vmatprep.subr.mxu1 %v603_v20 }
  0x17   :  { %537 = vmatpush3.msra.mxu0 %v32_v12 }
  0x18   :  { %538 = vmatprep.subr.mxu0 %v31_v13 }
  0x19   :  { %539 = vmatpush3.msra.mxu0 %v31_v13 }
  0x1a   :  { %540 = vmatprep.subr.mxu0 %v30_v14 }
  0x1b   :  { %541 = vmatpush3.msra.mxu0 %v30_v14 }
  0x1c   :  { %542 = vmatprep.subr.mxu0 %v29_v15 }
  0x1d   :  { %543 = vmatpush3.msra.mxu0 %v29_v15 }
  0x1e   :  { %544 = vmatprep.subr.mxu0 %v28_v16 }
  0x1f   :  { %545 = vmatpush3.msra.mxu0 %v28_v16 }
  0x20   :  { %546 = vmatprep.subr.mxu0 %v27_v18 }
  0x21   :  { %547 = vmatpush3.msra.mxu0 %v27_v18 }
  0x22   :  { %549 = vmatmul.mubr.f32.vlgmr.msra.gmra.mxu0 %v26_v19  ;;  %589 = vmatprep.subr.mxu0 %v603_v20 }
  0x23   :  { %591 = vmatprep.mubr.msk.f32.mxu0 %vm604_vm0, %v603_v20  ;;  %590 = vmatpush3.msra.mxu0 %v306_v51 }
  0xe2   :  { %v732_v29 = vpop.f32.mrf.mxu0 }
  0xe3   :  { %v120_v31 = vsel %vm118_vm1, %v732_v29, 0.0  ;;  %v129_v32 = vmul.f32 %v732_v29, %v732_v29 }
  0xe4   :  { %v734_v30 = vpop.f32.mrf.mxu0 }
  0xe5   :  { %v119_v33 = vsel %vm118_vm1, %v734_v30, 0.0  ;;  %v128_v34 = vmul.f32 %v734_v30, %v734_v30  ;;  %v131_v38 = vsel %vm118_vm1, %v129_v32, 0.0 }
  0xe6   :  { %v121_v35 = vadd.f32 %v120_v31, %v119_v33 }
  0xe7   :  { %v130_v36 = vsel %vm118_vm1, %v128_v34, 0.0 }
  0xe8   :  { %v122_v37 = vrot.slane %v121_v35, 4  ;;  %v132_v40 = vadd.f32 %v131_v38, %v130_v36 }
  0xea   :  { %v123_v39 = vadd.f32 %v122_v37, %v121_v35  ;;  %v133_v43 = vrot.slane %v132_v40, 4 }
  0xec   :  { %v124_v41 = vrot.slane %v123_v39, 2  ;;  %v134_v45 = vadd.f32 %v133_v43, %v132_v40 }
  0xee   :  { %v125_v42 = vadd.f32 %v124_v41, %v123_v39  ;;  %v135_v47 = vrot.slane %v134_v45, 2 }
  0xf0   :  { %v126_v44 = vrot.slane %v125_v42, 1  ;;  %v136_v48 = vadd.f32 %v135_v47, %v134_v45 }
  0xf2   :  { %v127_v46 = vadd.f32 %v126_v44, %v125_v42  ;;  %v137_v49 = vrot.slane %v136_v48, 1 }
  0xf4   :  { %568 = vmatmul.mubr.msk.f32.vlgmr.msra.gmra.mxu1 %vm118_vm1, %v127_v46  ;;  %v138_v50 = vadd.f32 %v137_v49, %v136_v48 }
  0xf5   :  { %571 = vmatpush3.msra.mxu1 %v146_v21  ;;  %586 = vmatprep.mubr.msk.f32.mxu1 %vm604_vm0, %v603_v20 }
  0xf6   :  { %572 = vmatprep.subr.mxu1 %v603_v20 }
  0xf7   :  { %573 = vmatpush3.msra.mxu1 %v145_v22 }
  0xf8   :  { %574 = vmatprep.subr.mxu1 %v603_v20 }
  0xf9   :  { %575 = vmatpush3.msra.mxu1 %v144_v23 }
  0xfa   :  { %576 = vmatprep.subr.mxu1 %v603_v20 }
  0xfb   :  { %577 = vmatpush3.msra.mxu1 %v143_v24 }
  0xfc   :  { %578 = vmatprep.subr.mxu1 %v603_v20 }
  0xfd   :  { %579 = vmatpush3.msra.mxu1 %v142_v25 }
  0xfe   :  { %580 = vmatprep.subr.mxu1 %v603_v20 }
  0xff   :  { %581 = vmatpush3.msra.mxu1 %v141_v26 }
 0x100   :  { %582 = vmatprep.subr.mxu1 %v603_v20 }
 0x101   :  { %583 = vmatpush3.msra.mxu1 %v140_v27 }
 0x102   :  { %584 = vmatprep.subr.mxu1 %v603_v20 }
 0x103   :  { %585 = vmatpush3.msra.mxu1 %v139_v28 }
 0x104   :  { %587 = vmatmul.mubr.msk.f32.vlgmr.msra.gmra.mxu1 %vm118_vm1, %v138_v50  ;;  %594 = vmatprep.subr.mxu1 %v603_v20 }
 0x105   :  { %596 = vmatprep.mubr.msk.f32.mxu1 %vm604_vm0, %v603_v20  ;;  %595 = vmatpush3.msra.mxu1 %v306_v51 }
 0x1b4   :  { %v216_v52 = vpop.f32.mrf.mxu1 }
 0x1b5   :  { %v294_v54 = vmul.f32 0.0078125, %v216_v52 }
 0x1b6   :  { %v569_v53 = vpop.f32.mrf.mxu1 }
 0x1b7   :  { %v296_v56 = vmul.f32 %v294_v54, %v294_v54 }
 0x1c4   :  { %v289_v55 = vpop.f32.mrf.mxu1 }
 0x1c5   :  { %v295_v57 = vmul.f32 0.0078125, %v289_v55 }
 0x1c6   :  { %v588_v58 = vpop.f32.mrf.mxu1 }
 0x1c7   :  { %v297_v59 = vsub.f32 %v295_v57, %v296_v56 }
 0x1c9   :  { %v298_v60 = vmax.f32 %v297_v59, 0.0 }
 0x1cb   :  { %v299_v61 = vadd.f32 1e-05, %v298_v60 }
 0x1cd   :  { %601 = vrsqrt.f32 %v299_v61 }
 0x1da   :  { %v602_v63 = vpop.eup %601 }
 0x1db   :  { %v302_v0 = vmul.f32 %v602_v63, %v301_v62 }
 0x1dd   :  { %592 = vmatmul.mubr.msk.f32.vlgmr.msra.gmra.mxu0 %vm307_vm2, %v302_v0  ;;  %v304_v2 = vmul.f32 %v302_v0, %v294_v54 }
 0x1df   :  { %v305_v3 = vsub.f32 %v303_v1, %v304_v2 }
 0x1e1   :  { %597 = vmatmul.mubr.msk.f32.vlgmr.msra.gmra.mxu1 %vm307_vm2, %v305_v3 }
 0x29d   :  { %v377_v7 = vpop.f32.mrf.mxu0 }
 0x29e   :  { %v457_v8 = vrot.slane %v377_v7, %v456_v6 }
 0x29f   :  { %v593_v9 = vpop.f32.mrf.mxu0 }
 0x2a0   :  { %v458_v11 = vmul.f32 %v457_v8, %v734_v30  ;;  %v459_v12 = vmul.f32 %v732_v29, %v457_v8 }
 0x2a1   :  { %v450_v10 = vpop.f32.mrf.mxu1 }
 0x2a2   :  { %v463_v13 = vrot.slane %v450_v10, %v456_v6 }
 0x2a3   :  { %v598_v14 = vpop.f32.mrf.mxu1 }
 0x2a4   :  { %v464_v15 = vadd.f32 %v463_v13, %v458_v11  ;;  %v465_v16 = vadd.f32 %v463_v13, %v459_v12 }
 0x2a6   :  { %466 = vst.msk [vmem:[%s785_s6] sm:$0xff] %vm118_vm1, %v464_v15  ;;  %467 = vst.msk [vmem:[%s785_s6 + $0x8] sm:$0xff] %vm118_vm1, %v465_v16 }

</bundles_post_ra>
